<compile_context>
chip_gen: v7x
topology: tpu7x:2x2x1
jax: 0.10.0
libtpu: 0.0.40
codegen_flags: <defaults>
</compile_context>

<pallas_src>
import functools

import jax
import jax.numpy as jnp
from jax.experimental import pallas as pl
from jax.experimental.pallas import tpu as pltpu


def _round_up(n, m):
    return ((n + m - 1) // m) * m


def generator_kernel(x_ref, w1_ref, b1_ref, w2_ref, b2_ref, o_ref):
    # ---- linear1: (TM, Din) @ (Din, H) + (1, H); bf16 MXU feed, f32 accum ----
    x_bf = x_ref[...].astype(jnp.bfloat16)
    h = jnp.dot(x_bf, w1_ref[...], preferred_element_type=jnp.float32)
    h = h + b1_ref[...]                       # broadcast (1, H) over rows, f32

    # ---- LeakyReLU(0.01): single VPU max ----
    h = jnp.maximum(h, 0.01 * h)

    # ---- linear2: (TM, H) @ (H, Dout) + (1, Dout); bf16 MXU feed, f32 accum ----
    y = jnp.dot(h.astype(jnp.bfloat16), w2_ref[...],
                preferred_element_type=jnp.float32)
    y = y + b2_ref[...]

    # ---- tanh epilogue (EUP), f32 ----
    o_ref[...] = jnp.tanh(y).astype(o_ref.dtype)


@functools.partial(jax.jit, static_argnames=("block_m",))
def generator_forward(x, w1_t, b1, w2_t, b2, *, block_m=512):
    """x: (B, Din); w1_t: (Din, H); b1: (1, H); w2_t: (H, Dout); b2: (1, Dout)."""
    B, Din = x.shape
    H = w1_t.shape[1]
    Dout = w2_t.shape[1]

    # --- lane-dense padding (zero pad is exact for the matmuls) ---
    Din_p = _round_up(Din, 128)
    Dout_p = _round_up(Dout, 128)
    if Din_p != Din:
        x = jnp.pad(x, ((0, 0), (0, Din_p - Din)))
        w1_t = jnp.pad(w1_t, ((0, Din_p - Din), (0, 0)))
    if Dout_p != Dout:
        w2_t = jnp.pad(w2_t, ((0, 0), (0, Dout_p - Dout)))
        b2 = jnp.pad(b2, ((0, 0), (0, Dout_p - Dout)))

    # --- batch tiling: big tiles for large batches, sublane-aligned otherwise ---
    tm = max(8, min(_round_up(block_m, 8), _round_up(B, 8)))
    B_p = _round_up(B, tm)
    if B_p != B:
        x = jnp.pad(x, ((0, B_p - B), (0, 0)))

    # Weights cast to bf16 once here (halves their DMA bytes / VMEM residency).
    w1_bf = w1_t.astype(jnp.bfloat16)
    w2_bf = w2_t.astype(jnp.bfloat16)

    grid = (B_p // tm,)

    flops = 2 * B_p * (Din_p * H + H * Dout_p)
    bytes_accessed = (x.size * 4 + w1_bf.size * 2 + w2_bf.size * 2
                      + b1.size * 4 + b2.size * 4 + B_p * Dout_p * 4)

    out = pl.pallas_call(
        generator_kernel,
        out_shape=jax.ShapeDtypeStruct((B_p, Dout_p), x.dtype),
        grid_spec=pl.GridSpec(
            grid=grid,
            in_specs=[
                pl.BlockSpec((tm, Din_p), lambda i: (i, 0)),     # x: tiled over batch
                pl.BlockSpec((Din_p, H), lambda i: (0, 0)),      # w1: resident
                pl.BlockSpec((1, H), lambda i: (0, 0)),          # b1: resident
                pl.BlockSpec((H, Dout_p), lambda i: (0, 0)),     # w2: resident
                pl.BlockSpec((1, Dout_p), lambda i: (0, 0)),     # b2: resident
            ],
            out_specs=pl.BlockSpec((tm, Dout_p), lambda i: (i, 0)),
        ),
        compiler_params=pltpu.CompilerParams(
            dimension_semantics=("parallel",),
        ),
        cost_estimate=pl.CostEstimate(
            flops=flops,
            transcendentals=B_p * Dout_p,
            bytes_accessed=bytes_accessed,
        ),
    )(x, w1_bf, b1, w2_bf, b2)

    return out[:B, :Dout]


def reference_forward(x, w1_t, b1, w2_t, b2):
    h = x @ w1_t + b1
    h = jnp.where(h > 0, h, 0.01 * h)
    y = h @ w2_t + b2
    return jnp.tanh(y)


if __name__ == "__main__":
    # Small shapes consistent with the module: latent_noise_dim=64, hidden=128,
    # img_dim=256.  batch=40 + block_m=16 exercises the multi-tile grid path
    # (padded to 48 rows -> grid of 3 batch tiles) while staying small.
    latent_noise_dim = 64
    hidden = 128
    img_dim = 256
    batch = 40

    key = jax.random.PRNGKey(0)
    kx, kw1, kb1, kw2, kb2 = jax.random.split(key, 5)

    x = jax.random.normal(kx, (batch, latent_noise_dim), dtype=jnp.float32)

    # PyTorch nn.Linear stores W as (out, in); we keep the transposed (in, out)
    # layout so the kernel computes plain x @ W + b on the MXU.
    bound1 = 1.0 / (latent_noise_dim ** 0.5)
    w1_t = jax.random.uniform(kw1, (latent_noise_dim, hidden),
                              minval=-bound1, maxval=bound1, dtype=jnp.float32)
    b1 = jax.random.uniform(kb1, (1, hidden),
                            minval=-bound1, maxval=bound1, dtype=jnp.float32)

    bound2 = 1.0 / (hidden ** 0.5)
    w2_t = jax.random.uniform(kw2, (hidden, img_dim),
                              minval=-bound2, maxval=bound2, dtype=jnp.float32)
    b2 = jax.random.uniform(kb2, (1, img_dim),
                            minval=-bound2, maxval=bound2, dtype=jnp.float32)

    out = generator_forward(x, w1_t, b1, w2_t, b2, block_m=16)
    out = jax.block_until_ready(out)

    ref = reference_forward(x, w1_t, b1, w2_t, b2)
    assert out.shape == (batch, img_dim), out.shape
    # bf16 MXU feed with f32 accumulation -> loosened tolerance vs f32 reference.
    assert jnp.allclose(out, ref, atol=2e-2, rtol=2e-2), (
        "mismatch vs reference; max abs diff = "
        f"{float(jnp.max(jnp.abs(out - ref)))}")

    print("KERNEL_OK")
</pallas_src>

<mosaic_0001>
module attributes {stable_mosaic.version = 11 : i64} {
  func.func @generator_kernel(%arg0: i32, %arg1: memref<16x128xf32, #tpu.memory_space<vmem>>, %arg2: memref<128x128xbf16, #tpu.memory_space<vmem>>, %arg3: memref<1x128xf32, #tpu.memory_space<vmem>>, %arg4: memref<128x256xbf16, #tpu.memory_space<vmem>>, %arg5: memref<1x256xf32, #tpu.memory_space<vmem>>, %arg6: memref<16x256xf32, #tpu.memory_space<vmem>>) attributes {dimension_semantics = [#tpu.dimension_semantics<parallel>], iteration_bounds = array<i64: 3>, scalar_prefetch = 0 : i64, scratch_operands = 0 : i64, tpu.core_type = #tpu.core_type<tc>, window_params = [{transform_indices = @transform_0, window_bounds = array<i64: 16, 128>}, {pipeline_mode = #tpu.pipeline_mode<synchronous>, transform_indices = @transform_1, window_bounds = array<i64: 128, 128>}, {pipeline_mode = #tpu.pipeline_mode<synchronous>, transform_indices = @transform_2, window_bounds = array<i64: 1, 128>}, {pipeline_mode = #tpu.pipeline_mode<synchronous>, transform_indices = @transform_3, window_bounds = array<i64: 128, 256>}, {pipeline_mode = #tpu.pipeline_mode<synchronous>, transform_indices = @transform_4, window_bounds = array<i64: 1, 256>}, {transform_indices = @transform_5, window_bounds = array<i64: 16, 256>}]} {
    %c0 = arith.constant 0 : index
    %c0_0 = arith.constant 0 : index
    %0 = vector.load %arg1[%c0, %c0_0] : memref<16x128xf32, #tpu.memory_space<vmem>>, vector<16x128xf32>
    %1 = arith.truncf %0 : vector<16x128xf32> to vector<16x128xbf16>
    %c0_1 = arith.constant 0 : index
    %c0_2 = arith.constant 0 : index
    %2 = vector.load %arg2[%c0_1, %c0_2] : memref<128x128xbf16, #tpu.memory_space<vmem>>, vector<128x128xbf16>
    %cst = arith.constant dense<0.000000e+00> : vector<16x128xf32>
    %3 = tpu.matmul %1, %2, %cst {dimension_numbers = #tpu.dot_dimension_numbers<[1], [0], [0], [1], [0, 0, 1, 1], [], []>} : vector<16x128xbf16>, vector<128x128xbf16>, vector<16x128xf32> -> vector<16x128xf32>
    %c0_3 = arith.constant 0 : index
    %c0_4 = arith.constant 0 : index
    %4 = vector.load %arg3[%c0_3, %c0_4] : memref<1x128xf32, #tpu.memory_space<vmem>>, vector<1x128xf32>
    %5 = vector.broadcast %4 : vector<1x128xf32> to vector<16x128xf32>
    %6 = arith.addf %3, %5 : vector<16x128xf32>
    %cst_5 = arith.constant 0.00999999977 : f32
    %7 = vector.broadcast %cst_5 : f32 to vector<16x128xf32>
    %8 = arith.mulf %7, %6 : vector<16x128xf32>
    %9 = arith.maximumf %6, %8 : vector<16x128xf32>
    %10 = arith.truncf %9 : vector<16x128xf32> to vector<16x128xbf16>
    %c0_6 = arith.constant 0 : index
    %c0_7 = arith.constant 0 : index
    %11 = vector.load %arg4[%c0_6, %c0_7] : memref<128x256xbf16, #tpu.memory_space<vmem>>, vector<128x256xbf16>
    %cst_8 = arith.constant dense<0.000000e+00> : vector<16x256xf32>
    %12 = tpu.matmul %10, %11, %cst_8 {dimension_numbers = #tpu.dot_dimension_numbers<[1], [0], [0], [1], [0, 0, 1, 1], [], []>} : vector<16x128xbf16>, vector<128x256xbf16>, vector<16x256xf32> -> vector<16x256xf32>
    %c0_9 = arith.constant 0 : index
    %c0_10 = arith.constant 0 : index
    %13 = vector.load %arg5[%c0_9, %c0_10] : memref<1x256xf32, #tpu.memory_space<vmem>>, vector<1x256xf32>
    %14 = vector.broadcast %13 : vector<1x256xf32> to vector<16x256xf32>
    %15 = arith.addf %12, %14 : vector<16x256xf32>
    %16 = math.tanh %15 : vector<16x256xf32>
    %c0_11 = arith.constant 0 : index
    %c0_12 = arith.constant 0 : index
    %17 = vector.load %arg6[%c0_11, %c0_12] : memref<16x256xf32, #tpu.memory_space<vmem>>, vector<16x256xf32>
    tpu.vector_store %arg6[%c0_11, %c0_12], %16 {strides = array<i32>} : memref<16x256xf32, #tpu.memory_space<vmem>>, vector<16x256xf32>,
    return
  }
  func.func @transform_0(%arg0: i32) -> (i32, i32) {
    %c0_i32 = arith.constant 0 : i32
    %c0_i32_0 = arith.constant 0 : i32
    return %arg0, %c0_i32 : i32, i32
  }
  func.func @transform_1(%arg0: i32) -> (i32, i32) {
    %c0_i32 = arith.constant 0 : i32
    %c0_i32_0 = arith.constant 0 : i32
    %c0_i32_1 = arith.constant 0 : i32
    return %c0_i32, %c0_i32_0 : i32, i32
  }
  func.func @transform_2(%arg0: i32) -> (i32, i32) {
    %c0_i32 = arith.constant 0 : i32
    %c0_i32_0 = arith.constant 0 : i32
    %c0_i32_1 = arith.constant 0 : i32
    return %c0_i32, %c0_i32_0 : i32, i32
  }
  func.func @transform_3(%arg0: i32) -> (i32, i32) {
    %c0_i32 = arith.constant 0 : i32
    %c0_i32_0 = arith.constant 0 : i32
    %c0_i32_1 = arith.constant 0 : i32
    return %c0_i32, %c0_i32_0 : i32, i32
  }
  func.func @transform_4(%arg0: i32) -> (i32, i32) {
    %c0_i32 = arith.constant 0 : i32
    %c0_i32_0 = arith.constant 0 : i32
    %c0_i32_1 = arith.constant 0 : i32
    return %c0_i32, %c0_i32_0 : i32, i32
  }
  func.func @transform_5(%arg0: i32) -> (i32, i32) {
    %c0_i32 = arith.constant 0 : i32
    %c0_i32_0 = arith.constant 0 : i32
    return %arg0, %c0_i32 : i32, i32
  }
}

</mosaic_0001>

<bundles_post_ra>
// kernel: generator_forward.1
= control target key start
LH: loop header
LB: loop body
LE: loop exit
PB: predicated region body
PF: predicated region fallthrough
CT: control target
= control target key end

     0   :  { %s727_s18 = smov 0   ;;  %s826_s0 = inlined_call_operand.vmem [shape: f32[48,128], index: 0, kind: input, shape index: {}]   ;;  %s827_s1 = inlined_call_operand.vmem [shape: bf16[128,128], index: 1, kind: input, shape index: {}]   ;;  %s828_s2 = inlined_call_operand.vmem [shape: f32[1,128], index: 2, kind: input, shape index: {}]   ;;  %s829_s3 = inlined_call_operand.vmem [shape: bf16[128,256], index: 3, kind: input, shape index: {}]   ;;  %s830_s4 = inlined_call_operand.vmem [shape: f32[1,256], index: 4, kind: input, shape index: {}]   ;;  %s831_s5 = inlined_call_operand.vmem [shape: f32[48,256], index: 5, kind: output, shape index: {}]  }
   0x1 LB: > { %s568_s19 = sadd.s32 4294967295, %s692_s18   ;;  %p572_p0 = scmp.ge.s32.totalorder %s692_s18, 1  ;;  %s692_s18 = sphi %s727_s18, %s15_s18  }
   0x2   : > { %p188_p1 = scmp.lt.s32.totalorder %s692_s18, 4 }
   0x4   : > { %p189_p2 = pnand %p572_p0, %p188_p1 }
   0x5   : > { %v646_v0 = vld [vmem:[%s827_s1] sm:$0xff] (!%p189_p2)   ;;  %v694_v1 = vmov (!%p189_p2), 0.0   ;;  %v647_v2 = vld [vmem:[%s827_s1 + $0x8] sm:$0xff] (!%p189_p2)   ;;  %vm695_vm0 = vmmov (!%p189_p2), 0   ;;  %v648_v3 = vld [vmem:[%s827_s1 + $0x10] sm:$0xff] (!%p189_p2)   ;;  %s573_s30 = sshll.u32 (!%p189_p2), %s568_s19, 1  ;;  %v369_v41 = vlaneseq (!%p189_p2) }
   0x6   : > { %192 = sbr.rel (%p189_p2) target bundleno = 489 (0x1e9), region = 40  ;;  %615 = vmatprep.subr.bf16.mxu0 (!%p189_p2), %v694_v1  ;;  %631 = vmatprep.mubr.msk.bf16.mxu0 (!%p189_p2), %vm695_vm0, %v694_v1  ;;  %v654_v4 = vld [vmem:[%s829_s3 + $0x4] ss:$8 sps:$4 sm:$0xff] (!%p189_p2)   ;;  %v649_v5 = vld [vmem:[%s827_s1 + $0x18] sm:$0xff] (!%p189_p2)   ;;  %v656_v6 = vld [vmem:[%s829_s3] ss:$8 sps:$4 sm:$0xff] (!%p189_p2)  }
   0x7   : > { %616 = vmatpush3.bf16.msra.mxu0 (!%p189_p2), %v646_v0  ;;  %459 = vmatprep.subr.bf16.mxu1 (!%p189_p2), %v654_v4  ;;  %v657_v7 = vld [vmem:[%s829_s3 + $0x14] ss:$8 sps:$4 sm:$0xff] (!%p189_p2)   ;;  %v659_v8 = vld [vmem:[%s829_s3 + $0x10] ss:$8 sps:$4 sm:$0xff] (!%p189_p2)   ;;  %p218_p3 = scmp.lt.s32.totalorder (!%p189_p2), %s573_s30, 5  ;;  %v650_v10 = vld [vmem:[%s827_s1 + $0x20] sm:$0xff] (!%p189_p2)  }
   0x8   : > { %617 = vmatprep.subr.bf16.mxu0 (!%p189_p2), %v694_v1  ;;  %460 = vmatpush1.bf16.msra.mxu1 (!%p189_p2), %v656_v6  ;;  %v660_v9 = vld [vmem:[%s829_s3 + $0x24] ss:$8 sps:$4 sm:$0xff] (!%p189_p2)   ;;  %v662_v11 = vld [vmem:[%s829_s3 + $0x20] ss:$8 sps:$4 sm:$0xff] (!%p189_p2)   ;;  %v663_v12 = vld [vmem:[%s829_s3 + $0x34] ss:$8 sps:$4 sm:$0xff] (!%p189_p2)  }
   0x9   : > { %461 = vmatprep.subr.bf16.mxu1 (!%p189_p2), %v657_v7  ;;  %v651_v13 = vld [vmem:[%s827_s1 + $0x28] sm:$0xff] (!%p189_p2)   ;;  %v665_v14 = vld [vmem:[%s829_s3 + $0x30] ss:$8 sps:$4 sm:$0xff] (!%p189_p2)   ;;  %v669_v18 = vld [vmem:[%s829_s3 + $0x54] ss:$8 sps:$4 sm:$0xff] (!%p189_p2)   ;;  %v696_v28 = vmov (!%p189_p2), 0  }
   0xa   : > { %v666_v15 = vld [vmem:[%s829_s3 + $0x44] ss:$8 sps:$4 sm:$0xff] (!%p189_p2)   ;;  %v652_v16 = vld [vmem:[%s827_s1 + $0x30] sm:$0xff] (!%p189_p2)   ;;  %v668_v17 = vld [vmem:[%s829_s3 + $0x40] ss:$8 sps:$4 sm:$0xff] (!%p189_p2)   ;;  %491 = vmatprep.mubr.bf16.mxu1 (!%p189_p2), %v696_v28  ;;  %v370_v42 = vshrl.u32 (!%p189_p2), %v369_v41, 7 }
   0xb   : > { %618 = vmatpush3.bf16.msra.mxu0 (!%p189_p2), %v647_v2  ;;  %v653_v19 = vld [vmem:[%s827_s1 + $0x38] sm:$0xff] (!%p189_p2)   ;;  %v672_v24 = vld [vmem:[%s829_s3 + $0x64] ss:$8 sps:$4 sm:$0xff] (!%p189_p2)   ;;  %v674_v25 = vld [vmem:[%s829_s3 + $0x60] ss:$8 sps:$4 sm:$0xff] (!%p189_p2)  }
   0xc   : > { %619 = vmatprep.subr.bf16.mxu0 (!%p189_p2), %v694_v1  ;;  %462 = vmatpush1.bf16.msra.mxu1 (!%p189_p2), %v659_v8  ;;  %v671_v23 = vld [vmem:[%s829_s3 + $0x50] ss:$8 sps:$4 sm:$0xff] (!%p189_p2)   ;;  %v675_v26 = vld [vmem:[%s829_s3 + $0x74] ss:$8 sps:$4 sm:$0xff] (!%p189_p2)   ;;  %v578_v29 = vld [vmem:[%s828_s2] ss:$0 sm:$0xff] (!%p189_p2) }
   0xd   : > { %s833_s30 = smov (!%p218_p3, %s573_s30), 5  ;;  %463 = vmatprep.subr.bf16.mxu1 %v660_v9  ;;  %v677_v27 = vld [vmem:[%s829_s3 + $0x70] ss:$8 sps:$4 sm:$0xff]   ;;  %v371_v43 = vsub.s32 0, %v370_v42  ;;  %v367_v44 = vld [vmem:[%s830_s4] sm:$0x3] }
   0xe   : > { %s574_s25 = sshll.u32 %s833_s30, 3  ;;  %v375_v45 = vsub.s32 1, %v370_v42  ;;  %s605_s6 = sshll.u32 %s833_s30, 4 }
   0xf   : > { %620 = vmatpush3.bf16.msra.mxu0 %v648_v3  ;;  %s221_s8 = scalar_lea.vmem %s826_s0, %s574_s25  ;;  %v372_v46 = vrot.slane %v367_v44, %v371_v43  ;;  %s228_s9 = scalar_lea.vmem %s831_s5, %s605_s6 }
  0x10   : > { %621 = vmatprep.subr.bf16.mxu0 %v694_v1  ;;  %464 = vmatpush1.bf16.msra.mxu1 %v662_v11  ;;  %v231_v20 = vld [vmem:[%s221_s8] sm:$0xff]  ;;  %v232_v21 = vld [vmem:[%s221_s8 + $0x8] sm:$0xff]  ;;  %v376_v47 = vrot.slane %v367_v44, %v375_v45 }
  0x11   : > { %465 = vmatprep.subr.bf16.mxu1 %v663_v12  ;;  %v233_v22 = vpack.c.bf16 %v232_v21, %v231_v20 }
  0x13   : > { %622 = vmatpush3.bf16.msra.mxu0 %v649_v5 }
  0x14   : > { %623 = vmatprep.subr.bf16.mxu0 %v694_v1  ;;  %466 = vmatpush1.bf16.msra.mxu1 %v665_v14 }
  0x15   : > { %467 = vmatprep.subr.bf16.mxu1 %v666_v15 }
  0x17   : > { %624 = vmatpush3.bf16.msra.mxu0 %v650_v10 }
  0x18   : > { %625 = vmatprep.subr.bf16.mxu0 %v694_v1  ;;  %468 = vmatpush1.bf16.msra.mxu1 %v668_v17 }
  0x19   : > { %469 = vmatprep.subr.bf16.mxu1 %v669_v18 }
  0x1b   : > { %626 = vmatpush3.bf16.msra.mxu0 %v651_v13 }
  0x1c   : > { %627 = vmatprep.subr.bf16.mxu0 %v694_v1  ;;  %470 = vmatpush1.bf16.msra.mxu1 %v671_v23 }
  0x1d   : > { %471 = vmatprep.subr.bf16.mxu1 %v672_v24 }
  0x1f   : > { %628 = vmatpush3.bf16.msra.mxu0 %v652_v16 }
  0x20   : > { %629 = vmatprep.subr.bf16.mxu0 %v694_v1  ;;  %472 = vmatpush1.bf16.msra.mxu1 %v674_v25 }
  0x21   : > { %473 = vmatprep.subr.bf16.mxu1 %v675_v26 }
  0x23   : > { %630 = vmatpush3.bf16.msra.mxu0 %v653_v19 }
  0x24   : > { %474 = vmatpush1.bf16.msra.mxu1 %v677_v27 }
  0x26   : > { %632 = vmatmul.mubr.bf16.vlgmr.msra.gmra.mrb[0].mxu0 %v233_v22 }
  0xf9   : > { %v339_v30 = vpop.f32.mrb[0].mxu0 }
  0xfa   : > { %v340_v31 = vadd.f32 %v578_v29, %v339_v30  ;;  %v633_v32 = vpop.f32.mrb[1].mxu0 }
  0xfb   : > { %v342_v33 = vpop.f32.mrb[2].mxu0 }
  0xfc   : > { %v346_v34 = vmul.f32 0.01, %v340_v31  ;;  %v343_v35 = vadd.f32 %v578_v29, %v342_v33  ;;  %v634_v36 = vpop.f32.mrb[3].mxu0 }
  0xfe   : > { %v347_v37 = vmul.f32 0.01, %v343_v35  ;;  %v348_v38 = vmax.f32 %v340_v31, %v346_v34 }
 0x100   : > { %v349_v39 = vmax.f32 %v343_v35, %v347_v37 }
 0x102   : > { %v350_v40 = vpack.c.bf16 %v349_v39, %v348_v38 }
 0x104   : > { %492 = vmatmul.mubr.bf16.vlgmr.msra.gmra.mrb[0].mxu1 %v350_v40 }
 0x1d7   : > { %v493_v48 = vpop.f32.mrb[0].mxu1 }
 0x1d8   : > { %v494_v49 = vadd.f32 %v493_v48, %v372_v46  ;;  %v495_v50 = vpop.f32.mrb[1].mxu1 }
 0x1d9   : > { %v496_v51 = vadd.f32 %v495_v50, %v376_v47  ;;  %v497_v52 = vpop.f32.mrb[2].mxu1 }
 0x1da   : > { %678 = vtanh.f32 %v494_v49  ;;  %v498_v53 = vadd.f32 %v497_v52, %v372_v46  ;;  %v499_v54 = vpop.f32.mrb[3].mxu1 }
 0x1db   : > { %680 = vtanh.f32 %v496_v51  ;;  %v500_v55 = vadd.f32 %v499_v54, %v376_v47 }
 0x1dc   : > { %682 = vtanh.f32 %v498_v53 }
 0x1dd   : > { %684 = vtanh.f32 %v500_v55 }
 0x1e4   : > { %v679_v56 = vpop.eup %678 }
 0x1e5   : > { %v681_v57 = vpop.eup %680  ;;  %506 = vst [vmem:[%s228_s9] sm:$0xff] %v679_v56 }
 0x1e6   : > { %v683_v58 = vpop.eup %682  ;;  %507 = vst [vmem:[%s228_s9 + $0x8] sm:$0xff] %v681_v57 }
 0x1e7   : > { %v685_v59 = vpop.eup %684  ;;  %508 = vst [vmem:[%s228_s9 + $0x10] sm:$0xff] %v683_v58 }
 0x1e8   : > { %509 = vst [vmem:[%s228_s9 + $0x18] sm:$0xff] %v685_v59 }
 0x1e9 PF: > { %s15_s18 = sadd.s32 1, %s692_s18  }
 0x1ea   : > { %p12_p4 = scmp.ge.s32.totalorder %s15_s18, 5  }
 0x1ec   :  { %14 = sbr.rel (!%p12_p4) target bundleno = 1 (0x1), region = 70 }

</bundles_post_ra>
